<compile_context>
chip_gen: v5e
topology: v5e:2x2
jax: 0.10.0
libtpu: 0.0.40
codegen_flags: <defaults>
</compile_context>

<pallas_src>
import jax
import jax.numpy as jnp
from jax.experimental import pallas as pl
from jax.experimental.pallas import tpu as pltpu


def _charrnn_seq_kernel(xs_ref, h0_ref, wxh_ref, whh_ref, wxo_ref, who_ref,
                        bh_ref, bo_ref, out_ref, hfin_ref):
    S, B, _ = xs_ref.shape
    H = whh_ref.shape[0]
    O = who_ref.shape[1]

    # Weights / biases loaded (and biases broadcast) ONCE, outside the loop.
    wxh = wxh_ref[...]                                   # (I, H) f32
    whh = whh_ref[...]                                   # (H, H) f32
    wxo = wxo_ref[...]                                   # (I, O) f32
    who = who_ref[...]                                   # (H, O) f32
    bh = jnp.broadcast_to(bh_ref[...], (B, H))           # (B, H) f32
    bo = jnp.broadcast_to(bo_ref[...], (B, O))           # (B, O) f32

    h = h0_ref[...]                                      # (B, H) f32, in vregs

    # Fully-unrolled static time loop; h is a vreg-carried value.
    for t in range(S):
        x = xs_ref[t]                                    # (B, I)

        # hidden' = [x | h] @ W_h.T + b_h   (split dots, no concat, no slice)
        h_new = (jnp.dot(x, wxh, preferred_element_type=jnp.float32)
                 + jnp.dot(h, whh, preferred_element_type=jnp.float32)
                 + bh)

        # logits  = [x | h] @ W_o.T + b_o
        logits = (jnp.dot(x, wxo, preferred_element_type=jnp.float32)
                  + jnp.dot(h, who, preferred_element_type=jnp.float32)
                  + bo)

        # Numerically stable log_softmax over dim=1, all f32.
        m = jnp.max(logits, axis=1, keepdims=True)
        shifted = logits - m
        lse = jnp.log(jnp.sum(jnp.exp(shifted), axis=1, keepdims=True))

        out_ref[t] = (shifted - lse).astype(out_ref.dtype)   # static-index store
        h = h_new

    hfin_ref[...] = h


def pack_charrnn_params(w_h, b_h, w_o, b_o, input_size):
    """One-time (outside the hot path) repack of the PyTorch Linear params.

    w_h: (H, I+H), b_h: (H,)   -- input_to_hidden
    w_o: (O, I+H), b_o: (O,)   -- input_to_output
    Returns wxh (I,H), whh (H,H), wxo (I,O), who (H,O), bh (1,H), bo (1,O),
    all float32 (no bf16 cast: keeps the recurrent hidden path drift-free).
    """
    wt_h = jnp.asarray(w_h, jnp.float32).T               # (I+H, H)
    wt_o = jnp.asarray(w_o, jnp.float32).T               # (I+H, O)
    wxh = wt_h[:input_size]
    whh = wt_h[input_size:]
    wxo = wt_o[:input_size]
    who = wt_o[input_size:]
    bh = jnp.asarray(b_h, jnp.float32).reshape(1, -1)
    bo = jnp.asarray(b_o, jnp.float32).reshape(1, -1)
    return wxh, whh, wxo, who, bh, bo


def charrnn_sequence(xs, h0, wxh, whh, wxo, who, bh, bo):
    """Run the whole recurrence in a single pallas_call (no grid).

    xs: (S, B, I) f32, h0: (B, H) f32.
    Returns (per-step log_softmax (S, B, O) f32, final hidden (B, H) f32).
    """
    S, B, _ = xs.shape
    H = whh.shape[0]
    O = who.shape[1]

    vmem = pl.BlockSpec(memory_space=pltpu.MemorySpace.VMEM)
    out, hidden = pl.pallas_call(
        _charrnn_seq_kernel,
        out_shape=(
            jax.ShapeDtypeStruct((S, B, O), jnp.float32),
            jax.ShapeDtypeStruct((B, H), jnp.float32),
        ),
        in_specs=[vmem] * 8,            # whole arrays resident in VMEM
        out_specs=(vmem, vmem),
    )(xs.astype(jnp.float32), h0.astype(jnp.float32),
      wxh, whh, wxo, who, bh, bo)
    return out, hidden


def charrnn_forward(x, h, wxh, whh, wxo, who, bh, bo):
    """Single-step call matching CharRNN.forward(_input, _hidden)."""
    out, hidden = charrnn_sequence(x[None], h, wxh, whh, wxo, who, bh, bo)
    return out[0], hidden


def _init_linear(key, out_features, in_features):
    # Deterministic init mimicking PyTorch Linear's U(-1/sqrt(fan_in), 1/sqrt(fan_in)).
    kw, kb = jax.random.split(key)
    bound = 1.0 / (in_features ** 0.5)
    w = jax.random.uniform(kw, (out_features, in_features), jnp.float32, -bound, bound)
    b = jax.random.uniform(kb, (out_features,), jnp.float32, -bound, bound)
    return w, b


if __name__ == "__main__":
    batch_size = 8          # >= 8 so f32 sublanes / MXU rows are fully used
    input_size = 16
    hidden_size = 32
    output_size = 16
    seq_len = 8

    key = jax.random.PRNGKey(0)
    k_x, k_wh, k_wo = jax.random.split(key, 3)

    xs = jax.random.normal(k_x, (seq_len, batch_size, input_size), jnp.float32)
    h0 = jnp.zeros((batch_size, hidden_size), jnp.float32)   # init_hidden()

    w_h, b_h = _init_linear(k_wh, hidden_size, input_size + hidden_size)
    w_o, b_o = _init_linear(k_wo, output_size, input_size + hidden_size)

    # One-time weight repack, hoisted out of the hot path.
    wxh, whh, wxo, who, bh, bo = pack_charrnn_params(w_h, b_h, w_o, b_o, input_size)

    # --- fused whole-sequence kernel (single pallas_call) -------------------
    out_seq, h_final = charrnn_sequence(xs, h0, wxh, whh, wxo, who, bh, bo)
    jax.block_until_ready((out_seq, h_final))

    # --- single-step call (module's forward signature) ----------------------
    out_step, h_step = charrnn_forward(xs[0], h0, wxh, whh, wxo, who, bh, bo)
    jax.block_until_ready((out_step, h_step))

    # --- pure-f32 reference (exact PyTorch-module semantics) ----------------
    import numpy as np

    w_h_np = np.asarray(w_h); b_h_np = np.asarray(b_h)
    w_o_np = np.asarray(w_o); b_o_np = np.asarray(b_o)

    def ref_step(x, h):
        concat = np.concatenate([x, h], axis=1)
        hidden = concat @ w_h_np.T + b_h_np
        logits = concat @ w_o_np.T + b_o_np
        m = logits.max(axis=1, keepdims=True)
        sh = logits - m
        out = sh - np.log(np.exp(sh).sum(axis=1, keepdims=True))
        return out, hidden

    h_ref = np.asarray(h0)
    for t in range(seq_len):
        o_ref, h_ref = ref_step(np.asarray(xs[t]), h_ref)
        assert np.allclose(np.asarray(out_seq[t]), o_ref, atol=5e-3), \
            f"step {t}: log_softmax mismatch"
    assert np.allclose(np.asarray(h_final), h_ref, atol=5e-3), "final hidden mismatch"

    o_ref0, h_ref0 = ref_step(np.asarray(xs[0]), np.asarray(h0))
    assert np.allclose(np.asarray(out_step), o_ref0, atol=5e-3), \
        "single-step log_softmax mismatch"
    assert np.allclose(np.asarray(h_step), h_ref0, atol=5e-3), \
        "single-step hidden mismatch"

    print("KERNEL_OK")
</pallas_src>

<mosaic_0001>
module attributes {stable_mosaic.version = 11 : i64} {
  func.func @_charrnn_seq_kernel(%arg0: memref<8x8x16xf32, #tpu.memory_space<vmem>>, %arg1: memref<8x32xf32, #tpu.memory_space<vmem>>, %arg2: memref<16x32xf32, #tpu.memory_space<vmem>>, %arg3: memref<32x32xf32, #tpu.memory_space<vmem>>, %arg4: memref<16x16xf32, #tpu.memory_space<vmem>>, %arg5: memref<32x16xf32, #tpu.memory_space<vmem>>, %arg6: memref<1x32xf32, #tpu.memory_space<vmem>>, %arg7: memref<1x16xf32, #tpu.memory_space<vmem>>, %arg8: memref<8x8x16xf32, #tpu.memory_space<vmem>>, %arg9: memref<8x32xf32, #tpu.memory_space<vmem>>) attributes {dimension_semantics = [], scalar_prefetch = 0 : i64, scratch_operands = 0 : i64, tpu.core_type = #tpu.core_type<tc>} {
    %c0 = arith.constant 0 : index
    %c0_0 = arith.constant 0 : index
    %0 = vector.load %arg2[%c0, %c0_0] : memref<16x32xf32, #tpu.memory_space<vmem>>, vector<16x32xf32>
    %c0_1 = arith.constant 0 : index
    %c0_2 = arith.constant 0 : index
    %1 = vector.load %arg3[%c0_1, %c0_2] : memref<32x32xf32, #tpu.memory_space<vmem>>, vector<32x32xf32>
    %c0_3 = arith.constant 0 : index
    %c0_4 = arith.constant 0 : index
    %2 = vector.load %arg4[%c0_3, %c0_4] : memref<16x16xf32, #tpu.memory_space<vmem>>, vector<16x16xf32>
    %c0_5 = arith.constant 0 : index
    %c0_6 = arith.constant 0 : index
    %3 = vector.load %arg5[%c0_5, %c0_6] : memref<32x16xf32, #tpu.memory_space<vmem>>, vector<32x16xf32>
    %c0_7 = arith.constant 0 : index
    %c0_8 = arith.constant 0 : index
    %4 = vector.load %arg6[%c0_7, %c0_8] : memref<1x32xf32, #tpu.memory_space<vmem>>, vector<1x32xf32>
    %5 = vector.shape_cast %4 : vector<1x32xf32> to vector<1x32xf32>
    %6 = vector.broadcast %5 : vector<1x32xf32> to vector<8x32xf32>
    %c0_9 = arith.constant 0 : index
    %c0_10 = arith.constant 0 : index
    %7 = vector.load %arg7[%c0_9, %c0_10] : memref<1x16xf32, #tpu.memory_space<vmem>>, vector<1x16xf32>
    %8 = vector.shape_cast %7 : vector<1x16xf32> to vector<1x16xf32>
    %9 = vector.broadcast %8 : vector<1x16xf32> to vector<8x16xf32>
    %c0_11 = arith.constant 0 : index
    %c0_12 = arith.constant 0 : index
    %10 = vector.load %arg1[%c0_11, %c0_12] : memref<8x32xf32, #tpu.memory_space<vmem>>, vector<8x32xf32>
    %c0_13 = arith.constant 0 : index
    %c0_14 = arith.constant 0 : index
    %c0_15 = arith.constant 0 : index
    %11 = vector.load %arg0[%c0_13, %c0_14, %c0_15] : memref<8x8x16xf32, #tpu.memory_space<vmem>>, vector<1x8x16xf32>
    %12 = vector.shape_cast %11 : vector<1x8x16xf32> to vector<8x16xf32>
    %cst = arith.constant dense<0.000000e+00> : vector<8x32xf32>
    %13 = tpu.matmul %12, %0, %cst {dimension_numbers = #tpu.dot_dimension_numbers<[1], [0], [0], [1], [0, 0, 1, 1], [], []>} : vector<8x16xf32>, vector<16x32xf32>, vector<8x32xf32> -> vector<8x32xf32>
    %cst_16 = arith.constant dense<0.000000e+00> : vector<8x32xf32>
    %14 = tpu.matmul %10, %1, %cst_16 {dimension_numbers = #tpu.dot_dimension_numbers<[1], [0], [0], [1], [0, 0, 1, 1], [], []>} : vector<8x32xf32>, vector<32x32xf32>, vector<8x32xf32> -> vector<8x32xf32>
    %15 = arith.addf %13, %14 : vector<8x32xf32>
    %16 = arith.addf %15, %6 : vector<8x32xf32>
    %cst_17 = arith.constant dense<0.000000e+00> : vector<8x16xf32>
    %17 = tpu.matmul %12, %2, %cst_17 {dimension_numbers = #tpu.dot_dimension_numbers<[1], [0], [0], [1], [0, 0, 1, 1], [], []>} : vector<8x16xf32>, vector<16x16xf32>, vector<8x16xf32> -> vector<8x16xf32>
    %cst_18 = arith.constant dense<0.000000e+00> : vector<8x16xf32>
    %18 = tpu.matmul %10, %3, %cst_18 {dimension_numbers = #tpu.dot_dimension_numbers<[1], [0], [0], [1], [0, 0, 1, 1], [], []>} : vector<8x32xf32>, vector<32x16xf32>, vector<8x16xf32> -> vector<8x16xf32>
    %19 = arith.addf %17, %18 : vector<8x16xf32>
    %20 = arith.addf %19, %9 : vector<8x16xf32>
    %cst_19 = arith.constant dense<0xFF800000> : vector<8xf32>
    %21 = vector.multi_reduction <maximumf>, %20, %cst_19 [1] : vector<8x16xf32> to vector<8xf32>
    %22 = vector.shape_cast %21 : vector<8xf32> to vector<8x1xf32>
    %23 = vector.broadcast %22 : vector<8x1xf32> to vector<8x16xf32>
    %24 = arith.subf %20, %23 : vector<8x16xf32>
    %25 = math.exp %24 : vector<8x16xf32>
    %cst_20 = arith.constant dense<0.000000e+00> : vector<8xf32>
    %26 = vector.multi_reduction <add>, %25, %cst_20 [1] : vector<8x16xf32> to vector<8xf32>
    %27 = vector.shape_cast %26 : vector<8xf32> to vector<8x1xf32>
    %28 = math.log %27 : vector<8x1xf32>
    %29 = vector.broadcast %28 : vector<8x1xf32> to vector<8x16xf32>
    %30 = arith.subf %24, %29 : vector<8x16xf32>
    %c0_21 = arith.constant 0 : index
    %c0_22 = arith.constant 0 : index
    %c0_23 = arith.constant 0 : index
    %31 = vector.load %arg8[%c0_21, %c0_22, %c0_23] : memref<8x8x16xf32, #tpu.memory_space<vmem>>, vector<1x8x16xf32>
    %32 = vector.shape_cast %31 : vector<1x8x16xf32> to vector<8x16xf32>
    %33 = vector.shape_cast %30 : vector<8x16xf32> to vector<1x8x16xf32>
    tpu.vector_store %arg8[%c0_21, %c0_22, %c0_23], %33 {strides = array<i32>} : memref<8x8x16xf32, #tpu.memory_space<vmem>>, vector<1x8x16xf32>,
    %c1 = arith.constant 1 : index
    %c0_24 = arith.constant 0 : index
    %c0_25 = arith.constant 0 : index
    %34 = vector.load %arg0[%c1, %c0_24, %c0_25] : memref<8x8x16xf32, #tpu.memory_space<vmem>>, vector<1x8x16xf32>
    %35 = vector.shape_cast %34 : vector<1x8x16xf32> to vector<8x16xf32>
    %cst_26 = arith.constant dense<0.000000e+00> : vector<8x32xf32>
    %36 = tpu.matmul %35, %0, %cst_26 {dimension_numbers = #tpu.dot_dimension_numbers<[1], [0], [0], [1], [0, 0, 1, 1], [], []>} : vector<8x16xf32>, vector<16x32xf32>, vector<8x32xf32> -> vector<8x32xf32>
    %cst_27 = arith.constant dense<0.000000e+00> : vector<8x32xf32>
    %37 = tpu.matmul %16, %1, %cst_27 {dimension_numbers = #tpu.dot_dimension_numbers<[1], [0], [0], [1], [0, 0, 1, 1], [], []>} : vector<8x32xf32>, vector<32x32xf32>, vector<8x32xf32> -> vector<8x32xf32>
    %38 = arith.addf %36, %37 : vector<8x32xf32>
    %39 = arith.addf %38, %6 : vector<8x32xf32>
    %cst_28 = arith.constant dense<0.000000e+00> : vector<8x16xf32>
    %40 = tpu.matmul %35, %2, %cst_28 {dimension_numbers = #tpu.dot_dimension_numbers<[1], [0], [0], [1], [0, 0, 1, 1], [], []>} : vector<8x16xf32>, vector<16x16xf32>, vector<8x16xf32> -> vector<8x16xf32>
    %cst_29 = arith.constant dense<0.000000e+00> : vector<8x16xf32>
    %41 = tpu.matmul %16, %3, %cst_29 {dimension_numbers = #tpu.dot_dimension_numbers<[1], [0], [0], [1], [0, 0, 1, 1], [], []>} : vector<8x32xf32>, vector<32x16xf32>, vector<8x16xf32> -> vector<8x16xf32>
    %42 = arith.addf %40, %41 : vector<8x16xf32>
    %43 = arith.addf %42, %9 : vector<8x16xf32>
    %cst_30 = arith.constant dense<0xFF800000> : vector<8xf32>
    %44 = vector.multi_reduction <maximumf>, %43, %cst_30 [1] : vector<8x16xf32> to vector<8xf32>
    %45 = vector.shape_cast %44 : vector<8xf32> to vector<8x1xf32>
    %46 = vector.broadcast %45 : vector<8x1xf32> to vector<8x16xf32>
    %47 = arith.subf %43, %46 : vector<8x16xf32>
    %48 = math.exp %47 : vector<8x16xf32>
    %cst_31 = arith.constant dense<0.000000e+00> : vector<8xf32>
    %49 = vector.multi_reduction <add>, %48, %cst_31 [1] : vector<8x16xf32> to vector<8xf32>
    %50 = vector.shape_cast %49 : vector<8xf32> to vector<8x1xf32>
    %51 = math.log %50 : vector<8x1xf32>
    %52 = vector.broadcast %51 : vector<8x1xf32> to vector<8x16xf32>
    %53 = arith.subf %47, %52 : vector<8x16xf32>
    %c1_32 = arith.constant 1 : index
    %c0_33 = arith.constant 0 : index
    %c0_34 = arith.constant 0 : index
    %54 = vector.load %arg8[%c1_32, %c0_33, %c0_34] : memref<8x8x16xf32, #tpu.memory_space<vmem>>, vector<1x8x16xf32>
    %55 = vector.shape_cast %54 : vector<1x8x16xf32> to vector<8x16xf32>
    %56 = vector.shape_cast %53 : vector<8x16xf32> to vector<1x8x16xf32>
    tpu.vector_store %arg8[%c1_32, %c0_33, %c0_34], %56 {strides = array<i32>} : memref<8x8x16xf32, #tpu.memory_space<vmem>>, vector<1x8x16xf32>,
    %c2 = arith.constant 2 : index
    %c0_35 = arith.constant 0 : index
    %c0_36 = arith.constant 0 : index
    %57 = vector.load %arg0[%c2, %c0_35, %c0_36] : memref<8x8x16xf32, #tpu.memory_space<vmem>>, vector<1x8x16xf32>
    %58 = vector.shape_cast %57 : vector<1x8x16xf32> to vector<8x16xf32>
    %cst_37 = arith.constant dense<0.000000e+00> : vector<8x32xf32>
    %59 = tpu.matmul %58, %0, %cst_37 {dimension_numbers = #tpu.dot_dimension_numbers<[1], [0], [0], [1], [0, 0, 1, 1], [], []>} : vector<8x16xf32>, vector<16x32xf32>, vector<8x32xf32> -> vector<8x32xf32>
    %cst_38 = arith.constant dense<0.000000e+00> : vector<8x32xf32>
    %60 = tpu.matmul %39, %1, %cst_38 {dimension_numbers = #tpu.dot_dimension_numbers<[1], [0], [0], [1], [0, 0, 1, 1], [], []>} : vector<8x32xf32>, vector<32x32xf32>, vector<8x32xf32> -> vector<8x32xf32>
    %61 = arith.addf %59, %60 : vector<8x32xf32>
    %62 = arith.addf %61, %6 : vector<8x32xf32>
    %cst_39 = arith.constant dense<0.000000e+00> : vector<8x16xf32>
    %63 = tpu.matmul %58, %2, %cst_39 {dimension_numbers = #tpu.dot_dimension_numbers<[1], [0], [0], [1], [0, 0, 1, 1], [], []>} : vector<8x16xf32>, vector<16x16xf32>, vector<8x16xf32> -> vector<8x16xf32>
    %cst_40 = arith.constant dense<0.000000e+00> : vector<8x16xf32>
    %64 = tpu.matmul %39, %3, %cst_40 {dimension_numbers = #tpu.dot_dimension_numbers<[1], [0], [0], [1], [0, 0, 1, 1], [], []>} : vector<8x32xf32>, vector<32x16xf32>, vector<8x16xf32> -> vector<8x16xf32>
    %65 = arith.addf %63, %64 : vector<8x16xf32>
    %66 = arith.addf %65, %9 : vector<8x16xf32>
    %cst_41 = arith.constant dense<0xFF800000> : vector<8xf32>
    %67 = vector.multi_reduction <maximumf>, %66, %cst_41 [1] : vector<8x16xf32> to vector<8xf32>
    %68 = vector.shape_cast %67 : vector<8xf32> to vector<8x1xf32>
    %69 = vector.broadcast %68 : vector<8x1xf32> to vector<8x16xf32>
    %70 = arith.subf %66, %69 : vector<8x16xf32>
    %71 = math.exp %70 : vector<8x16xf32>
    %cst_42 = arith.constant dense<0.000000e+00> : vector<8xf32>
    %72 = vector.multi_reduction <add>, %71, %cst_42 [1] : vector<8x16xf32> to vector<8xf32>
    %73 = vector.shape_cast %72 : vector<8xf32> to vector<8x1xf32>
    %74 = math.log %73 : vector<8x1xf32>
    %75 = vector.broadcast %74 : vector<8x1xf32> to vector<8x16xf32>
    %76 = arith.subf %70, %75 : vector<8x16xf32>
    %c2_43 = arith.constant 2 : index
    %c0_44 = arith.constant 0 : index
    %c0_45 = arith.constant 0 : index
    %77 = vector.load %arg8[%c2_43, %c0_44, %c0_45] : memref<8x8x16xf32, #tpu.memory_space<vmem>>, vector<1x8x16xf32>
    %78 = vector.shape_cast %77 : vector<1x8x16xf32> to vector<8x16xf32>
    %79 = vector.shape_cast %76 : vector<8x16xf32> to vector<1x8x16xf32>
    tpu.vector_store %arg8[%c2_43, %c0_44, %c0_45], %79 {strides = array<i32>} : memref<8x8x16xf32, #tpu.memory_space<vmem>>, vector<1x8x16xf32>,
    %c3 = arith.constant 3 : index
    %c0_46 = arith.constant 0 : index
    %c0_47 = arith.constant 0 : index
    %80 = vector.load %arg0[%c3, %c0_46, %c0_47] : memref<8x8x16xf32, #tpu.memory_space<vmem>>, vector<1x8x16xf32>
    %81 = vector.shape_cast %80 : vector<1x8x16xf32> to vector<8x16xf32>
    %cst_48 = arith.constant dense<0.000000e+00> : vector<8x32xf32>
    %82 = tpu.matmul %81, %0, %cst_48 {dimension_numbers = #tpu.dot_dimension_numbers<[1], [0], [0], [1], [0, 0, 1, 1], [], []>} : vector<8x16xf32>, vector<16x32xf32>, vector<8x32xf32> -> vector<8x32xf32>
    %cst_49 = arith.constant dense<0.000000e+00> : vector<8x32xf32>
    %83 = tpu.matmul %62, %1, %cst_49 {dimension_numbers = #tpu.dot_dimension_numbers<[1], [0], [0], [1], [0, 0, 1, 1], [], []>} : vector<8x32xf32>, vector<32x32xf32>, vector<8x32xf32> -> vector<8x32xf32>
    %84 = arith.addf %82, %83 : vector<8x32xf32>
    %85 = arith.addf %84, %6 : vector<8x32xf32>
    %cst_50 = arith.constant dense<0.000000e+00> : vector<8x16xf32>
    %86 = tpu.matmul %81, %2, %cst_50 {dimension_numbers = #tpu.dot_dimension_numbers<[1], [0], [0], [1], [0, 0, 1, 1], [], []>} : vector<8x16xf32>, vector<16x16xf32>, vector<8x16xf32> -> vector<8x16xf32>
    %cst_51 = arith.constant dense<0.000000e+00> : vector<8x16xf32>
    %87 = tpu.matmul %62, %3, %cst_51 {dimension_numbers = #tpu.dot_dimension_numbers<[1], [0], [0], [1], [0, 0, 1, 1], [], []>} : vector<8x32xf32>, vector<32x16xf32>, vector<8x16xf32> -> vector<8x16xf32>
    %88 = arith.addf %86, %87 : vector<8x16xf32>
    %89 = arith.addf %88, %9 : vector<8x16xf32>
    %cst_52 = arith.constant dense<0xFF800000> : vector<8xf32>
    %90 = vector.multi_reduction <maximumf>, %89, %cst_52 [1] : vector<8x16xf32> to vector<8xf32>
    %91 = vector.shape_cast %90 : vector<8xf32> to vector<8x1xf32>
    %92 = vector.broadcast %91 : vector<8x1xf32> to vector<8x16xf32>
    %93 = arith.subf %89, %92 : vector<8x16xf32>
    %94 = math.exp %93 : vector<8x16xf32>
    %cst_53 = arith.constant dense<0.000000e+00> : vector<8xf32>
    %95 = vector.multi_reduction <add>, %94, %cst_53 [1] : vector<8x16xf32> to vector<8xf32>
    %96 = vector.shape_cast %95 : vector<8xf32> to vector<8x1xf32>
    %97 = math.log %96 : vector<8x1xf32>
    %98 = vector.broadcast %97 : vector<8x1xf32> to vector<8x16xf32>
    %99 = arith.subf %93, %98 : vector<8x16xf32>
    %c3_54 = arith.constant 3 : index
    %c0_55 = arith.constant 0 : index
    %c0_56 = arith.constant 0 : index
    %100 = vector.load %arg8[%c3_54, %c0_55, %c0_56] : memref<8x8x16xf32, #tpu.memory_space<vmem>>, vector<1x8x16xf32>
    %101 = vector.shape_cast %100 : vector<1x8x16xf32> to vector<8x16xf32>
    %102 = vector.shape_cast %99 : vector<8x16xf32> to vector<1x8x16xf32>
    tpu.vector_store %arg8[%c3_54, %c0_55, %c0_56], %102 {strides = array<i32>} : memref<8x8x16xf32, #tpu.memory_space<vmem>>, vector<1x8x16xf32>,
    %c4 = arith.constant 4 : index
    %c0_57 = arith.constant 0 : index
    %c0_58 = arith.constant 0 : index
    %103 = vector.load %arg0[%c4, %c0_57, %c0_58] : memref<8x8x16xf32, #tpu.memory_space<vmem>>, vector<1x8x16xf32>
    %104 = vector.shape_cast %103 : vector<1x8x16xf32> to vector<8x16xf32>
    %cst_59 = arith.constant dense<0.000000e+00> : vector<8x32xf32>
    %105 = tpu.matmul %104, %0, %cst_59 {dimension_numbers = #tpu.dot_dimension_numbers<[1], [0], [0], [1], [0, 0, 1, 1], [], []>} : vector<8x16xf32>, vector<16x32xf32>, vector<8x32xf32> -> vector<8x32xf32>
    %cst_60 = arith.constant dense<0.000000e+00> : vector<8x32xf32>
    %106 = tpu.matmul %85, %1, %cst_60 {dimension_numbers = #tpu.dot_dimension_numbers<[1], [0], [0], [1], [0, 0, 1, 1], [], []>} : vector<8x32xf32>, vector<32x32xf32>, vector<8x32xf32> -> vector<8x32xf32>
    %107 = arith.addf %105, %106 : vector<8x32xf32>
    %108 = arith.addf %107, %6 : vector<8x32xf32>
    %cst_61 = arith.constant dense<0.000000e+00> : vector<8x16xf32>
    %109 = tpu.matmul %104, %2, %cst_61 {dimension_numbers = #tpu.dot_dimension_numbers<[1], [0], [0], [1], [0, 0, 1, 1], [], []>} : vector<8x16xf32>, vector<16x16xf32>, vector<8x16xf32> -> vector<8x16xf32>
    %cst_62 = arith.constant dense<0.000000e+00> : vector<8x16xf32>
    %110 = tpu.matmul %85, %3, %cst_62 {dimension_numbers = #tpu.dot_dimension_numbers<[1], [0], [0], [1], [0, 0, 1, 1], [], []>} : vector<8x32xf32>, vector<32x16xf32>, vector<8x16xf32> -> vector<8x16xf32>
    %111 = arith.addf %109, %110 : vector<8x16xf32>
    %112 = arith.addf %111, %9 : vector<8x16xf32>
    %cst_63 = arith.constant dense<0xFF800000> : vector<8xf32>
    %113 = vector.multi_reduction <maximumf>, %112, %cst_63 [1] : vector<8x16xf32> to vector<8xf32>
    %114 = vector.shape_cast %113 : vector<8xf32> to vector<8x1xf32>
    %115 = vector.broadcast %114 : vector<8x1xf32> to vector<8x16xf32>
    %116 = arith.subf %112, %115 : vector<8x16xf32>
    %117 = math.exp %116 : vector<8x16xf32>
    %cst_64 = arith.constant dense<0.000000e+00> : vector<8xf32>
    %118 = vector.multi_reduction <add>, %117, %cst_64 [1] : vector<8x16xf32> to vector<8xf32>
    %119 = vector.shape_cast %118 : vector<8xf32> to vector<8x1xf32>
    %120 = math.log %119 : vector<8x1xf32>
    %121 = vector.broadcast %120 : vector<8x1xf32> to vector<8x16xf32>
    %122 = arith.subf %116, %121 : vector<8x16xf32>
    %c4_65 = arith.constant 4 : index
    %c0_66 = arith.constant 0 : index
    %c0_67 = arith.constant 0 : index
    %123 = vector.load %arg8[%c4_65, %c0_66, %c0_67] : memref<8x8x16xf32, #tpu.memory_space<vmem>>, vector<1x8x16xf32>
    %124 = vector.shape_cast %123 : vector<1x8x16xf32> to vector<8x16xf32>
    %125 = vector.shape_cast %122 : vector<8x16xf32> to vector<1x8x16xf32>
    tpu.vector_store %arg8[%c4_65, %c0_66, %c0_67], %125 {strides = array<i32>} : memref<8x8x16xf32, #tpu.memory_space<vmem>>, vector<1x8x16xf32>,
    %c5 = arith.constant 5 : index
    %c0_68 = arith.constant 0 : index
    %c0_69 = arith.constant 0 : index
    %126 = vector.load %arg0[%c5, %c0_68, %c0_69] : memref<8x8x16xf32, #tpu.memory_space<vmem>>, vector<1x8x16xf32>
    %127 = vector.shape_cast %126 : vector<1x8x16xf32> to vector<8x16xf32>
    %cst_70 = arith.constant dense<0.000000e+00> : vector<8x32xf32>
    %128 = tpu.matmul %127, %0, %cst_70 {dimension_numbers = #tpu.dot_dimension_numbers<[1], [0], [0], [1], [0, 0, 1, 1], [], []>} : vector<8x16xf32>, vector<16x32xf32>, vector<8x32xf32> -> vector<8x32xf32>
    %cst_71 = arith.constant dense<0.000000e+00> : vector<8x32xf32>
    %129 = tpu.matmul %108, %1, %cst_71 {dimension_numbers = #tpu.dot_dimension_numbers<[1], [0], [0], [1], [0, 0, 1, 1], [], []>} : vector<8x32xf32>, vector<32x32xf32>, vector<8x32xf32> -> vector<8x32xf32>
    %130 = arith.addf %128, %129 : vector<8x32xf32>
    %131 = arith.addf %130, %6 : vector<8x32xf32>
    %cst_72 = arith.constant dense<0.000000e+00> : vector<8x16xf32>
    %132 = tpu.matmul %127, %2, %cst_72 {dimension_numbers = #tpu.dot_dimension_numbers<[1], [0], [0], [1], [0, 0, 1, 1], [], []>} : vector<8x16xf32>, vector<16x16xf32>, vector<8x16xf32> -> vector<8x16xf32>
    %cst_73 = arith.constant dense<0.000000e+00> : vector<8x16xf32>
    %133 = tpu.matmul %108, %3, %cst_73 {dimension_numbers = #tpu.dot_dimension_numbers<[1], [0], [0], [1], [0, 0, 1, 1], [], []>} : vector<8x32xf32>, vector<32x16xf32>, vector<8x16xf32> -> vector<8x16xf32>
    %134 = arith.addf %132, %133 : vector<8x16xf32>
    %135 = arith.addf %134, %9 : vector<8x16xf32>
    %cst_74 = arith.constant dense<0xFF800000> : vector<8xf32>
    %136 = vector.multi_reduction <maximumf>, %135, %cst_74 [1] : vector<8x16xf32> to vector<8xf32>
    %137 = vector.shape_cast %136 : vector<8xf32> to vector<8x1xf32>
    %138 = vector.broadcast %137 : vector<8x1xf32> to vector<8x16xf32>
    %139 = arith.subf %135, %138 : vector<8x16xf32>
    %140 = math.exp %139 : vector<8x16xf32>
    %cst_75 = arith.constant dense<0.000000e+00> : vector<8xf32>
    %141 = vector.multi_reduction <add>, %140, %cst_75 [1] : vector<8x16xf32> to vector<8xf32>
    %142 = vector.shape_cast %141 : vector<8xf32> to vector<8x1xf32>
    %143 = math.log %142 : vector<8x1xf32>
    %144 = vector.broadcast %143 : vector<8x1xf32> to vector<8x16xf32>
    %145 = arith.subf %139, %144 : vector<8x16xf32>
    %c5_76 = arith.constant 5 : index
    %c0_77 = arith.constant 0 : index
    %c0_78 = arith.constant 0 : index
    %146 = vector.load %arg8[%c5_76, %c0_77, %c0_78] : memref<8x8x16xf32, #tpu.memory_space<vmem>>, vector<1x8x16xf32>
    %147 = vector.shape_cast %146 : vector<1x8x16xf32> to vector<8x16xf32>
    %148 = vector.shape_cast %145 : vector<8x16xf32> to vector<1x8x16xf32>
    tpu.vector_store %arg8[%c5_76, %c0_77, %c0_78], %148 {strides = array<i32>} : memref<8x8x16xf32, #tpu.memory_space<vmem>>, vector<1x8x16xf32>,
    %c6 = arith.constant 6 : index
    %c0_79 = arith.constant 0 : index
    %c0_80 = arith.constant 0 : index
    %149 = vector.load %arg0[%c6, %c0_79, %c0_80] : memref<8x8x16xf32, #tpu.memory_space<vmem>>, vector<1x8x16xf32>
    %150 = vector.shape_cast %149 : vector<1x8x16xf32> to vector<8x16xf32>
    %cst_81 = arith.constant dense<0.000000e+00> : vector<8x32xf32>
    %151 = tpu.matmul %150, %0, %cst_81 {dimension_numbers = #tpu.dot_dimension_numbers<[1], [0], [0], [1], [0, 0, 1, 1], [], []>} : vector<8x16xf32>, vector<16x32xf32>, vector<8x32xf32> -> vector<8x32xf32>
    %cst_82 = arith.constant dense<0.000000e+00> : vector<8x32xf32>
    %152 = tpu.matmul %131, %1, %cst_82 {dimension_numbers = #tpu.dot_dimension_numbers<[1], [0], [0], [1], [0, 0, 1, 1], [], []>} : vector<8x32xf32>, vector<32x32xf32>, vector<8x32xf32> -> vector<8x32xf32>
    %153 = arith.addf %151, %152 : vector<8x32xf32>
    %154 = arith.addf %153, %6 : vector<8x32xf32>
    %cst_83 = arith.constant dense<0.000000e+00> : vector<8x16xf32>
    %155 = tpu.matmul %150, %2, %cst_83 {dimension_numbers = #tpu.dot_dimension_numbers<[1], [0], [0], [1], [0, 0, 1, 1], [], []>} : vector<8x16xf32>, vector<16x16xf32>, vector<8x16xf32> -> vector<8x16xf32>
    %cst_84 = arith.constant dense<0.000000e+00> : vector<8x16xf32>
    %156 = tpu.matmul %131, %3, %cst_84 {dimension_numbers = #tpu.dot_dimension_numbers<[1], [0], [0], [1], [0, 0, 1, 1], [], []>} : vector<8x32xf32>, vector<32x16xf32>, vector<8x16xf32> -> vector<8x16xf32>
    %157 = arith.addf %155, %156 : vector<8x16xf32>
    %158 = arith.addf %157, %9 : vector<8x16xf32>
    %cst_85 = arith.constant dense<0xFF800000> : vector<8xf32>
    %159 = vector.multi_reduction <maximumf>, %158, %cst_85 [1] : vector<8x16xf32> to vector<8xf32>
    %160 = vector.shape_cast %159 : vector<8xf32> to vector<8x1xf32>
    %161 = vector.broadcast %160 : vector<8x1xf32> to vector<8x16xf32>
    %162 = arith.subf %158, %161 : vector<8x16xf32>
    %163 = math.exp %162 : vector<8x16xf32>
    %cst_86 = arith.constant dense<0.000000e+00> : vector<8xf32>
    %164 = vector.multi_reduction <add>, %163, %cst_86 [1] : vector<8x16xf32> to vector<8xf32>
    %165 = vector.shape_cast %164 : vector<8xf32> to vector<8x1xf32>
    %166 = math.log %165 : vector<8x1xf32>
    %167 = vector.broadcast %166 : vector<8x1xf32> to vector<8x16xf32>
    %168 = arith.subf %162, %167 : vector<8x16xf32>
    %c6_87 = arith.constant 6 : index
    %c0_88 = arith.constant 0 : index
    %c0_89 = arith.constant 0 : index
    %169 = vector.load %arg8[%c6_87, %c0_88, %c0_89] : memref<8x8x16xf32, #tpu.memory_space<vmem>>, vector<1x8x16xf32>
    %170 = vector.shape_cast %169 : vector<1x8x16xf32> to vector<8x16xf32>
    %171 = vector.shape_cast %168 : vector<8x16xf32> to vector<1x8x16xf32>
    tpu.vector_store %arg8[%c6_87, %c0_88, %c0_89], %171 {strides = array<i32>} : memref<8x8x16xf32, #tpu.memory_space<vmem>>, vector<1x8x16xf32>,
    %c7 = arith.constant 7 : index
    %c0_90 = arith.constant 0 : index
    %c0_91 = arith.constant 0 : index
    %172 = vector.load %arg0[%c7, %c0_90, %c0_91] : memref<8x8x16xf32, #tpu.memory_space<vmem>>, vector<1x8x16xf32>
    %173 = vector.shape_cast %172 : vector<1x8x16xf32> to vector<8x16xf32>
    %cst_92 = arith.constant dense<0.000000e+00> : vector<8x32xf32>
    %174 = tpu.matmul %173, %0, %cst_92 {dimension_numbers = #tpu.dot_dimension_numbers<[1], [0], [0], [1], [0, 0, 1, 1], [], []>} : vector<8x16xf32>, vector<16x32xf32>, vector<8x32xf32> -> vector<8x32xf32>
    %cst_93 = arith.constant dense<0.000000e+00> : vector<8x32xf32>
    %175 = tpu.matmul %154, %1, %cst_93 {dimension_numbers = #tpu.dot_dimension_numbers<[1], [0], [0], [1], [0, 0, 1, 1], [], []>} : vector<8x32xf32>, vector<32x32xf32>, vector<8x32xf32> -> vector<8x32xf32>
    %176 = arith.addf %174, %175 : vector<8x32xf32>
    %177 = arith.addf %176, %6 : vector<8x32xf32>
    %cst_94 = arith.constant dense<0.000000e+00> : vector<8x16xf32>
    %178 = tpu.matmul %173, %2, %cst_94 {dimension_numbers = #tpu.dot_dimension_numbers<[1], [0], [0], [1], [0, 0, 1, 1], [], []>} : vector<8x16xf32>, vector<16x16xf32>, vector<8x16xf32> -> vector<8x16xf32>
    %cst_95 = arith.constant dense<0.000000e+00> : vector<8x16xf32>
    %179 = tpu.matmul %154, %3, %cst_95 {dimension_numbers = #tpu.dot_dimension_numbers<[1], [0], [0], [1], [0, 0, 1, 1], [], []>} : vector<8x32xf32>, vector<32x16xf32>, vector<8x16xf32> -> vector<8x16xf32>
    %180 = arith.addf %178, %179 : vector<8x16xf32>
    %181 = arith.addf %180, %9 : vector<8x16xf32>
    %cst_96 = arith.constant dense<0xFF800000> : vector<8xf32>
    %182 = vector.multi_reduction <maximumf>, %181, %cst_96 [1] : vector<8x16xf32> to vector<8xf32>
    %183 = vector.shape_cast %182 : vector<8xf32> to vector<8x1xf32>
    %184 = vector.broadcast %183 : vector<8x1xf32> to vector<8x16xf32>
    %185 = arith.subf %181, %184 : vector<8x16xf32>
    %186 = math.exp %185 : vector<8x16xf32>
    %cst_97 = arith.constant dense<0.000000e+00> : vector<8xf32>
    %187 = vector.multi_reduction <add>, %186, %cst_97 [1] : vector<8x16xf32> to vector<8xf32>
    %188 = vector.shape_cast %187 : vector<8xf32> to vector<8x1xf32>
    %189 = math.log %188 : vector<8x1xf32>
    %190 = vector.broadcast %189 : vector<8x1xf32> to vector<8x16xf32>
    %191 = arith.subf %185, %190 : vector<8x16xf32>
    %c7_98 = arith.constant 7 : index
    %c0_99 = arith.constant 0 : index
    %c0_100 = arith.constant 0 : index
    %192 = vector.load %arg8[%c7_98, %c0_99, %c0_100] : memref<8x8x16xf32, #tpu.memory_space<vmem>>, vector<1x8x16xf32>
    %193 = vector.shape_cast %192 : vector<1x8x16xf32> to vector<8x16xf32>
    %194 = vector.shape_cast %191 : vector<8x16xf32> to vector<1x8x16xf32>
    tpu.vector_store %arg8[%c7_98, %c0_99, %c0_100], %194 {strides = array<i32>} : memref<8x8x16xf32, #tpu.memory_space<vmem>>, vector<1x8x16xf32>,
    %c0_101 = arith.constant 0 : index
    %c0_102 = arith.constant 0 : index
    %195 = vector.load %arg9[%c0_101, %c0_102] : memref<8x32xf32, #tpu.memory_space<vmem>>, vector<8x32xf32>
    tpu.vector_store %arg9[%c0_101, %c0_102], %177 {strides = array<i32>} : memref<8x32xf32, #tpu.memory_space<vmem>>, vector<8x32xf32>,
    return
  }
}

</mosaic_0001>

<bundles_post_ra>
// kernel: tpu_custom_call.1
= control target key start
LH: loop header
LB: loop body
LE: loop exit
PB: predicated region body
PF: predicated region fallthrough
CT: control target
= control target key end

     0   :  { %15 = vsyncpa [#allocation3], 0  ;;  %s1514_s0 = inlined_call_operand.hbm [shape: f32[8,8,16], index: 0, kind: input, shape index: {}]   ;;  %s1515_s1 = inlined_call_operand.hbm [shape: f32[8,32], index: 1, kind: input, shape index: {}]   ;;  %s1516_s2 = inlined_call_operand.vmem [shape: f32[16,32], index: 2, kind: input, shape index: {}]   ;;  %s1517_s3 = inlined_call_operand.vmem [shape: f32[32,32], index: 3, kind: input, shape index: {}]   ;;  %s1518_s4 = inlined_call_operand.hbm [shape: f32[16,16], index: 4, kind: input, shape index: {}]   ;;  %s1519_s5 = inlined_call_operand.vmem [shape: f32[32,16], index: 5, kind: input, shape index: {}]   ;;  %s1520_s6 = inlined_call_operand.vmem [shape: f32[1,32], index: 6, kind: input, shape index: {}]   ;;  %s1521_s7 = inlined_call_operand.vmem [shape: f32[1,16], index: 7, kind: input, shape index: {}]   ;;  %s1522_s8 = inlined_call_operand.hbm [shape: f32[8,8,16], index: 8, kind: output, shape index: {0}]   ;;  %s1523_s9 = inlined_call_operand.hbm [shape: f32[8,32], index: 9, kind: output, shape index: {1}]  }
   0x1   :  { %16 = vsyncpa [#allocation6], 0 }
   0x2   :  { %17 = vsyncpa [#allocation4], 0  ;;  %s37_s11 = sshll.u32 %s1515_s1, 4  ;;  %s38_s11 = int_to_ptr.hbm [resolvable:$true] %s37_s11 }
   0x3   :  { %18 = vsyncpa [#allocation10], 0  ;;  %s1169_s12 = smov [#allocation5]   ;;  %s23_s16 = sshll.u32 %s1514_s0, 4  ;;  %s24_s16 = int_to_ptr.hbm [resolvable:$true] %s23_s16 }
   0x4   :  { %s39_s13 = sshll.u32 %s1169_s12, 4  ;;  %s1170_s17 = smov [#allocation2]   ;;  %s40_s13 = int_to_ptr.vmem [resolvable:$true] %s39_s13 }
   0x5   :  { %42 = dma.hbm_to_vmem [thread:$0]  %s38_s11, 128, %s40_s13, [#allocation6]  }
   0x6   :  { %s25_s18 = sshll.u32 %s1170_s17, 4  ;;  %s1171_s19 = smov 128   ;;  %s26_s18 = int_to_ptr.vmem [resolvable:$true] %s25_s18 }
   0x7   :  { %s1172_s20 = smov 8   ;;  %s51_s22 = sshll.u32 %s1518_s4, 4  ;;  %s52_s22 = int_to_ptr.hbm [resolvable:$true] %s51_s22 }
   0x8   :  { %31 = dma.hbm_to_vmem [thread:$0]  %s24_s16, 1024, %s26_s18, [#allocation3], %s1171_s19, %s1171_s19, %s1172_s20  }
   0x9   :  { %s1173_s23 = smov [#allocation7]  }
   0xa   :  { %s53_s24 = sshll.u32 %s1173_s23, 4  ;;  %s54_s24 = int_to_ptr.vmem [resolvable:$true] %s53_s24 }
   0xb   :  { %59 = dma.hbm_to_vmem [thread:$0]  %s52_s22, 256, %s54_s24, [#allocation6], %s1171_s19, %s1171_s19, %s1172_s20  }
   0xc   :  { %1161 = dma.done.wait [#allocation3], 1024  }
   0xd   :  { %1162 = vsyncadd [#allocation3], 4294966272 }
   0xe   :  { %1163 = dma.done.wait [#allocation6], 384  }
   0xf   :  { %1164 = vsyncadd [#allocation6], 4294966912  ;;  %v1244_v0 = vld [vmem:[%s1517_s3 + $0x18] sm:$0xff]  ;;  %v1254_v2 = vld [vmem:[%s1517_s3 + $0x10] sm:$0xff]  ;;  %vm124_vm0 = vcmask 130048   ;;  %vm100_vm1 = vcmask 261120  }
  0x10   :  { %v1249_v1 = vld [vmem:[%s1519_s5 + $0x18] sm:$0xff]  ;;  %116 = vmatpush.msra.mxu0 %v1244_v0  ;;  %v1261_v3 = vld [vmem:[%s1519_s5 + $0x10] sm:$0xff]  ;;  %v1266_v4 = vld [vmem:[%s1516_s2 + $0x8] sm:$0xff]  ;;  %s952_s25 = sshll.u32 %s1523_s9, 4  ;;  %s1175_s9 = smov [#allocation8]   ;;  %s953_s25 = int_to_ptr.hbm [resolvable:$true] %s952_s25 }
  0x11   :  { %161 = vmatpush.msra.mxu2 %v1249_v1  ;;  %v1271_v5 = vld [vmem:[%s1517_s3 + $0x8] sm:$0xff]  ;;  %142 = vmatpush.msra.mxu1 %v1266_v4  ;;  %v1279_v7 = vld [vmem:[#allocation7 + $0x8] sm:$0xff]  ;;  %v1286_v8 = vld [vmem:[%s1516_s2] sm:$0xff]  ;;  %s936_s26 = sshll.u32 %s1175_s9, 4  ;;  %s938_s28 = sshll.u32 %s1522_s8, 4  ;;  %s937_s26 = int_to_ptr.vmem [resolvable:$true] %s936_s26  ;;  %s939_s28 = int_to_ptr.hbm [resolvable:$true] %s938_s28 }
  0x12   :  { %v1277_v6 = vld [vmem:[%s1519_s5 + $0x8] sm:$0xff]  ;;  %117 = vmatpush.msra.mxu0 %v1254_v2  ;;  %183 = vmatpush.msra.mxu3 %v1279_v7  ;;  %v1294_v10 = vld [vmem:[%s1517_s3] sm:$0xff]  ;;  %v308_v26 = vld [vmem:[#allocation2 + $0x10] sm:$0xff] }
  0x13   :  { %162 = vmatpush.msra.mxu2 %v1261_v3  ;;  %v1288_v9 = vld [vmem:[#allocation7] sm:$0xff]  ;;  %143 = vmatpush.msra.mxu1 %v1286_v8  ;;  %v1300_v11 = vld [vmem:[%s1519_s5] sm:$0xff]  ;;  %v412_v36 = vld [vmem:[#allocation2 + $0x18] sm:$0xff] }
  0x14   :  { %v99_v12 = vld [vmem:[#allocation2] sm:$0xff]  ;;  %118 = vmatpush.msra.mxu0 %v1271_v5  ;;  %184 = vmatpush.msra.mxu3 %v1288_v9  ;;  %v204_v14 = vld [vmem:[#allocation2 + $0x8] sm:$0xff] }
  0x15   :  { %163 = vmatpush.msra.mxu2 %v1277_v6  ;;  %v98_v13 = vld [vmem:[#allocation5] sm:$0xff]  ;;  %969 = vmatmul.msk.f32.vlgmr.msra.gmra.mxu1 %vm124_vm0, %v99_v12  ;;  %v620_v56 = vld [vmem:[#allocation2 + $0x28] sm:$0xff] }
  0x16   :  { %119 = vmatpush.msra.mxu0 %v1294_v10  ;;  %971 = vmatmul.msk.f32.vlgmr.msra.gmra.mxu3 %vm124_vm0, %v99_v12  ;;  %v1344_v16 = vld [vmem:[%s1520_s6] ss:$0 sm:$0xff]  ;;  %s1174_s6 = smov [#allocation9]  }
  0x17   :  { %164 = vmatpush.msra.mxu2 %v1300_v11  ;;  %968 = vmatmul.msk.f32.vlgmr.msra.gmra.mxu0 %vm100_vm1, %v98_v13  ;;  %v1352_v21 = vld [vmem:[%s1521_s7] ss:$0 sm:$0xff]  ;;  %s950_s7 = sshll.u32 %s1174_s6, 4  ;;  %s951_s7 = int_to_ptr.vmem [resolvable:$true] %s950_s7 }
  0x18   :  { %970 = vmatmul.msk.f32.vlgmr.msra.gmra.mxu2 %vm100_vm1, %v98_v13  ;;  %245 = vmatpush.msrb.mxu3 %v1266_v4  ;;  %v516_v46 = vld [vmem:[#allocation2 + $0x20] sm:$0xff] }
  0x19   :  { %286 = vmatpush.msrb.mxu2 %v1279_v7  ;;  %220 = vmatpush.msrb.mxu1 %v1244_v0 }
  0x1a   :  { %264 = vmatpush.msrb.mxu0 %v1249_v1  ;;  %246 = vmatpush.msrb.mxu3 %v1286_v8 }
  0x1b   :  { %287 = vmatpush.msrb.mxu2 %v1288_v9  ;;  %221 = vmatpush.msrb.mxu1 %v1254_v2 }
  0x1c   :  { %265 = vmatpush.msrb.mxu0 %v1261_v3  ;;  %349 = vmatpush.msra.mxu3 %v1266_v4 }
  0x1d   :  { %222 = vmatpush.msrb.mxu1 %v1271_v5  ;;  %390 = vmatpush.msra.mxu2 %v1279_v7 }
  0x1e   :  { %266 = vmatpush.msrb.mxu0 %v1277_v6  ;;  %350 = vmatpush.msra.mxu3 %v1286_v8 }
  0x1f   :  { %223 = vmatpush.msrb.mxu1 %v1294_v10  ;;  %973 = vmatmul.msk.f32.vlgmr.msrb.gmra.mxu3 %vm124_vm0, %v204_v14 }
  0x20   :  { %975 = vmatmul.msk.f32.vlgmr.msrb.gmra.mxu2 %vm124_vm0, %v204_v14  ;;  %267 = vmatpush.msrb.mxu0 %v1300_v11 }
  0x21   :  { %324 = vmatpush.msra.mxu1 %v1244_v0  ;;  %391 = vmatpush.msra.mxu2 %v1288_v9 }
  0x22   :  { %368 = vmatpush.msra.mxu0 %v1249_v1  ;;  %453 = vmatpush.msrb.mxu3 %v1266_v4 }
  0x23   :  { %325 = vmatpush.msra.mxu1 %v1254_v2  ;;  %494 = vmatpush.msrb.mxu2 %v1279_v7 }
  0x24   :  { %369 = vmatpush.msra.mxu0 %v1261_v3  ;;  %454 = vmatpush.msrb.mxu3 %v1286_v8 }
  0x25   :  { %326 = vmatpush.msra.mxu1 %v1271_v5  ;;  %495 = vmatpush.msrb.mxu2 %v1288_v9 }
  0x26   :  { %370 = vmatpush.msra.mxu0 %v1277_v6 }
  0x27   :  { %327 = vmatpush.msra.mxu1 %v1294_v10  ;;  %977 = vmatmul.msk.f32.vlgmr.msra.gmra.mxu3 %vm124_vm0, %v308_v26 }
  0x28   :  { %371 = vmatpush.msra.mxu0 %v1300_v11  ;;  %979 = vmatmul.msk.f32.vlgmr.msra.gmra.mxu2 %vm124_vm0, %v308_v26 }
  0x29   :  { %557 = vmatpush.msra.mxu3 %v1266_v4  ;;  %598 = vmatpush.msra.mxu2 %v1279_v7 }
  0x2b   :  { %558 = vmatpush.msra.mxu3 %v1286_v8  ;;  %599 = vmatpush.msra.mxu2 %v1288_v9 }
  0x2f   :  { %981 = vmatmul.msk.f32.vlgmr.msrb.gmra.mxu3 %vm124_vm0, %v412_v36 }
  0x30   :  { %983 = vmatmul.msk.f32.vlgmr.msrb.gmra.mxu2 %vm124_vm0, %v412_v36  ;;  %661 = vmatpush.msrb.mxu3 %v1266_v4 }
  0x31   :  { %702 = vmatpush.msrb.mxu2 %v1279_v7 }
  0x32   :  { %662 = vmatpush.msrb.mxu3 %v1286_v8 }
  0x33   :  { %703 = vmatpush.msrb.mxu2 %v1288_v9 }
  0x37   :  { %985 = vmatmul.msk.f32.vlgmr.msra.gmra.mxu3 %vm124_vm0, %v516_v46 }
  0x38   :  { %987 = vmatmul.msk.f32.vlgmr.msra.gmra.mxu2 %vm124_vm0, %v516_v46  ;;  %765 = vmatpush.msra.mxu3 %v1266_v4 }
  0x39   :  { %806 = vmatpush.msra.mxu2 %v1279_v7 }
  0x3a   :  { %766 = vmatpush.msra.mxu3 %v1286_v8 }
  0x3b   :  { %807 = vmatpush.msra.mxu2 %v1288_v9 }
  0x3f   :  { %989 = vmatmul.msk.f32.vlgmr.msrb.gmra.mxu3 %vm124_vm0, %v620_v56 }
  0x40   :  { %991 = vmatmul.msk.f32.vlgmr.msrb.gmra.mxu2 %vm124_vm0, %v620_v56  ;;  %869 = vmatpush.msrb.mxu3 %v1266_v4 }
  0x41   :  { %910 = vmatpush.msrb.mxu2 %v1279_v7  ;;  %v724_v7 = vld [vmem:[#allocation2 + $0x30] sm:$0xff] }
  0x42   :  { %870 = vmatpush.msrb.mxu3 %v1286_v8 }
  0x43   :  { %911 = vmatpush.msrb.mxu2 %v1288_v9 }
  0x47   :  { %993 = vmatmul.msk.f32.vlgmr.msra.gmra.mxu3 %vm124_vm0, %v724_v7 }
  0x48   :  { %995 = vmatmul.msk.f32.vlgmr.msra.gmra.mxu2 %vm124_vm0, %v724_v7 }
  0x92   :  { %v145_v15 = vpop.f32.mrf.mxu1 }
  0x94   :  { %v121_v17 = vpop.f32.mrf.mxu0 }
  0x95   :  { %v146_v18 = vadd.f32 %v145_v15, %v121_v17 }
  0x97   :  { %v148_v19 = vadd.f32 %v1344_v16, %v146_v18 }
  0x99   :  { %972 = vmatmul.msk.f32.vlgmr.msrb.gmra.mxu1 %vm100_vm1, %v148_v19  ;;  %974 = vmatmul.msk.f32.vlgmr.msrb.gmra.mxu0 %vm100_vm1, %v148_v19  ;;  %v186_v22 = vpop.f32.mrf.mxu3 }
  0x9a   :  { %428 = vmatpush.msrb.mxu1 %v1244_v0  ;;  %472 = vmatpush.msrb.mxu0 %v1249_v1 }
  0x9b   :  { %v166_v20 = vpop.f32.mrf.mxu2 }
  0x9c   :  { %v187_v23 = vadd.f32 %v186_v22, %v166_v20  ;;  %429 = vmatpush.msrb.mxu1 %v1254_v2  ;;  %473 = vmatpush.msrb.mxu0 %v1261_v3 }
  0x9e   :  { %v1359_v24 = vadd.f32 %v1352_v21, %v187_v23  ;;  %430 = vmatpush.msrb.mxu1 %v1271_v5  ;;  %474 = vmatpush.msrb.mxu0 %v1277_v6 }
  0xa0   :  { %v190_v25 = vsel %vm124_vm0, %v1359_v24, -inf  ;;  %431 = vmatpush.msrb.mxu1 %v1294_v10  ;;  %475 = vmatpush.msrb.mxu0 %v1300_v11 }
  0xa1   :  { %191 = vmax.xlane.f32.xlu0 %v190_v25  ;;  %v828_v25 = vld [vmem:[#allocation2 + $0x38] sm:$0xff] }
  0xa2   :  { %v248_v27 = vpop.f32.mrf.mxu3  ;;  %997 = vmatmul.msk.f32.vlgmr.msrb.gmra.mxu3 %vm124_vm0, %v828_v25  ;;  %999 = vmatmul.msk.f32.vlgmr.msrb.gmra.mxu2 %vm124_vm0, %v828_v25 }
  0xa3   :  { %v289_v28 = vpop.f32.mrf.mxu2 }
  0xaa   :  { %v352_v37 = vpop.f32.mrf.mxu3 }
  0xab   :  { %v393_v38 = vpop.f32.mrf.mxu2 }
  0xb2   :  { %v456_v47 = vpop.f32.mrf.mxu3 }
  0xb3   :  { %v497_v48 = vpop.f32.mrf.mxu2 }
  0xba   :  { %v560_v57 = vpop.f32.mrf.mxu3 }
  0xbb   :  { %v601_v58 = vpop.f32.mrf.mxu2 }
 0x116   :  { %v225_v29 = vpop.f32.mrf.mxu1  ;;  %v269_v30 = vpop.f32.mrf.mxu0 }
 0x117   :  { %v249_v31 = vadd.f32 %v248_v27, %v225_v29  ;;  %v290_v32 = vadd.f32 %v289_v28, %v269_v30 }
 0x119   :  { %v251_v33 = vadd.f32 %v1344_v16, %v249_v31  ;;  %v1375_v34 = vadd.f32 %v1352_v21, %v290_v32 }
 0x11b   :  { %976 = vmatmul.msk.f32.vlgmr.msra.gmra.mxu1 %vm100_vm1, %v251_v33  ;;  %978 = vmatmul.msk.f32.vlgmr.msra.gmra.mxu0 %vm100_vm1, %v251_v33  ;;  %v293_v35 = vsel %vm124_vm0, %v1375_v34, -inf }
 0x11c   :  { %294 = vmax.xlane.f32.xlu0 %v293_v35  ;;  %532 = vmatpush.msra.mxu1 %v1244_v0 }
 0x11d   :  { %576 = vmatpush.msra.mxu0 %v1249_v1 }
 0x11e   :  { %533 = vmatpush.msra.mxu1 %v1254_v2 }
 0x11f   :  { %577 = vmatpush.msra.mxu0 %v1261_v3 }
 0x120   :  { %534 = vmatpush.msra.mxu1 %v1271_v5 }
 0x121   :  { %578 = vmatpush.msra.mxu0 %v1277_v6 }
 0x122   :  { %535 = vmatpush.msra.mxu1 %v1294_v10 }
 0x123   :  { %579 = vmatpush.msra.mxu0 %v1300_v11 }
 0x198   :  { %v329_v39 = vpop.f32.mrf.mxu1  ;;  %v373_v40 = vpop.f32.mrf.mxu0 }
 0x199   :  { %v353_v41 = vadd.f32 %v352_v37, %v329_v39  ;;  %v394_v42 = vadd.f32 %v393_v38, %v373_v40 }
 0x19b   :  { %v355_v43 = vadd.f32 %v1344_v16, %v353_v41  ;;  %v1397_v44 = vadd.f32 %v1352_v21, %v394_v42 }
 0x19d   :  { %980 = vmatmul.msk.f32.vlgmr.msrb.gmra.mxu1 %vm100_vm1, %v355_v43  ;;  %982 = vmatmul.msk.f32.vlgmr.msrb.gmra.mxu0 %vm100_vm1, %v355_v43  ;;  %v397_v45 = vsel %vm124_vm0, %v1397_v44, -inf }
 0x19e   :  { %398 = vmax.xlane.f32.xlu1 %v397_v45  ;;  %636 = vmatpush.msrb.mxu1 %v1244_v0 }
 0x19f   :  { %680 = vmatpush.msrb.mxu0 %v1249_v1 }
 0x1a0   :  { %637 = vmatpush.msrb.mxu1 %v1254_v2 }
 0x1a1   :  { %681 = vmatpush.msrb.mxu0 %v1261_v3 }
 0x1a2   :  { %638 = vmatpush.msrb.mxu1 %v1271_v5 }
 0x1a3   :  { %682 = vmatpush.msrb.mxu0 %v1277_v6 }
 0x1a4   :  { %639 = vmatpush.msrb.mxu1 %v1294_v10 }
 0x1a5   :  { %683 = vmatpush.msrb.mxu0 %v1300_v11 }
 0x211   :  { %v1451_v8 = vpop.xlane.xlu1 %398 }
 0x21a   :  { %v433_v49 = vpop.f32.mrf.mxu1  ;;  %v477_v50 = vpop.f32.mrf.mxu0 }
 0x21b   :  { %v457_v51 = vadd.f32 %v456_v47, %v433_v49  ;;  %v498_v52 = vadd.f32 %v497_v48, %v477_v50 }
 0x21d   :  { %v459_v53 = vadd.f32 %v1344_v16, %v457_v51  ;;  %v500_v54 = vadd.f32 %v1352_v21, %v498_v52 }
 0x21f   :  { %984 = vmatmul.msk.f32.vlgmr.msra.gmra.mxu1 %vm100_vm1, %v459_v53  ;;  %986 = vmatmul.msk.f32.vlgmr.msra.gmra.mxu0 %vm100_vm1, %v459_v53  ;;  %v501_v55 = vsel %vm124_vm0, %v500_v54, -inf }
 0x220   :  { %502 = vmax.xlane.f32.xlu1 %v501_v55  ;;  %740 = vmatpush.msra.mxu1 %v1244_v0 }
 0x221   :  { %784 = vmatpush.msra.mxu0 %v1249_v1 }
 0x222   :  { %741 = vmatpush.msra.mxu1 %v1254_v2 }
 0x223   :  { %785 = vmatpush.msra.mxu0 %v1261_v3 }
 0x224   :  { %742 = vmatpush.msra.mxu1 %v1271_v5 }
 0x225   :  { %786 = vmatpush.msra.mxu0 %v1277_v6 }
 0x226   :  { %743 = vmatpush.msra.mxu1 %v1294_v10 }
 0x227   :  { %787 = vmatpush.msra.mxu0 %v1300_v11 }
 0x29c   :  { %v537_v59 = vpop.f32.mrf.mxu1  ;;  %v581_v60 = vpop.f32.mrf.mxu0 }
 0x29d   :  { %v561_v61 = vadd.f32 %v560_v57, %v537_v59  ;;  %v602_v62 = vadd.f32 %v601_v58, %v581_v60  ;;  %v1484_v58 = vsub.f32 %v1397_v44, %v1451_v8 }
 0x29f   :  { %v563_v63 = vadd.f32 %v1344_v16, %v561_v61  ;;  %v604_v12 = vadd.f32 %v1352_v21, %v602_v62  ;;  %v401_v62 = vmul.f32 1.442695, %v1484_v58 }
 0x2a1   :  { %988 = vmatmul.msk.f32.vlgmr.msrb.gmra.mxu1 %vm100_vm1, %v563_v63  ;;  %990 = vmatmul.msk.f32.vlgmr.msrb.gmra.mxu0 %vm100_vm1, %v563_v63  ;;  %v605_v4 = vsel %vm124_vm0, %v604_v12, -inf }
 0x2a2   :  { %606 = vmax.xlane.f32.xlu2 %v605_v4  ;;  %888 = vmatpush.msrb.mxu0 %v1249_v1  ;;  %v192_v1 = vpop.xlane.xlu0 %191 }
 0x2a3   :  { %844 = vmatpush.msrb.mxu1 %v1244_v0  ;;  %v193_v0 = vsub.f32 %v1359_v24, %v192_v1 }
 0x2a4   :  { %889 = vmatpush.msrb.mxu0 %v1261_v3  ;;  %v664_v3 = vpop.f32.mrf.mxu3 }
 0x2a5   :  { %845 = vmatpush.msrb.mxu1 %v1254_v2  ;;  %v705_v2 = vpop.f32.mrf.mxu2  ;;  %v194_v9 = vmul.f32 1.442695, %v193_v0 }
 0x2a6   :  { %890 = vmatpush.msrb.mxu0 %v1277_v6 }
 0x2a7   :  { %846 = vmatpush.msrb.mxu1 %v1271_v5  ;;  %v503_v5 = vpop.xlane.xlu1 %502  ;;  %1009 = vpow2.f32 %v194_v9 }
 0x2a8   :  { %891 = vmatpush.msrb.mxu0 %v1300_v11  ;;  %v504_v17 = vsub.f32 %v500_v54, %v503_v5 }
 0x2a9   :  { %847 = vmatpush.msrb.mxu1 %v1294_v10 }
 0x2aa   :  { %v505_v19 = vmul.f32 1.442695, %v504_v17  ;;  %v295_v28 = vpop.xlane.xlu0 %294 }
 0x2ab   :  { %v1467_v29 = vsub.f32 %v1375_v34, %v295_v28 }
 0x2ac   :  { %1011 = vpow2.f32 %v505_v19  ;;  %v768_v30 = vpop.f32.mrf.mxu3 }
 0x2ad   :  { %v1010_v20 = vpop.eup %1009  ;;  %v809_v31 = vpop.f32.mrf.mxu2  ;;  %v297_v33 = vmul.f32 1.442695, %v1467_v29 }
 0x2ae   :  { %v196_v22 = vsel %vm124_vm0, %v1010_v20, 0.0 }
 0x2b2   :  { %v1012_v23 = vpop.eup %1011 }
 0x2b3   :  { %v507_v24 = vsel %vm124_vm0, %v1012_v23, 0.0 }
 0x2b4   :  { %v872_v59 = vpop.f32.mrf.mxu3 }
 0x2b5   :  { %v913_v60 = vpop.f32.mrf.mxu2 }
 0x315   :  { %v607_v26 = vpop.xlane.xlu2 %606 }
 0x316   :  { %v1472_v41 = vsub.f32 %v604_v12, %v607_v26 }
 0x318   :  { %v609_v46 = vmul.f32 1.442695, %v1472_v41 }
 0x31e   :  { %v641_v6 = vpop.f32.mrf.mxu1  ;;  %v685_v13 = vpop.f32.mrf.mxu0 }
 0x31f   :  { %v665_v14 = vadd.f32 %v664_v3, %v641_v6  ;;  %v706_v11 = vadd.f32 %v705_v2, %v685_v13 }
 0x321   :  { %v667_v10 = vadd.f32 %v1344_v16, %v665_v14  ;;  %v1456_v15 = vadd.f32 %v1352_v21, %v706_v11 }
 0x323   :  { %992 = vmatmul.msk.f32.vlgmr.msra.gmra.mxu1 %vm100_vm1, %v667_v10  ;;  %994 = vmatmul.msk.f32.vlgmr.msra.gmra.mxu0 %vm100_vm1, %v667_v10  ;;  %v709_v18 = vsel %vm124_vm0, %v1456_v15, -inf }
 0x324   :  { %710 = vmax.xlane.f32.xlu2 %v709_v18 }
 0x32c   :  { %197 = vadd.xlane.f32.xlu2 %v196_v22 }
 0x334   :  { %508 = vadd.xlane.f32.xlu2 %v507_v24 }
 0x397   :  { %v711_v27 = vpop.xlane.xlu2 %710 }
 0x398   :  { %v712_v44 = vsub.f32 %v1456_v15, %v711_v27 }
 0x39a   :  { %v713_v5 = vmul.f32 1.442695, %v712_v44 }
 0x39f   :  { %v198_v32 = vpop.xlane.xlu2 %197 }
 0x3a0   :  { %1013 = vlog2.f32 %v198_v32  ;;  %v745_v35 = vpop.f32.mrf.mxu1  ;;  %v789_v36 = vpop.f32.mrf.mxu0 }
 0x3a1   :  { %v769_v37 = vadd.f32 %v768_v30, %v745_v35  ;;  %v810_v38 = vadd.f32 %v809_v31, %v789_v36  ;;  %1015 = vpow2.f32 %v297_v33 }
 0x3a3   :  { %v771_v39 = vadd.f32 %v1344_v16, %v769_v37  ;;  %v812_v40 = vadd.f32 %v1352_v21, %v810_v38 }
 0x3a5   :  { %996 = vmatmul.msk.f32.vlgmr.msrb.gmra.mxu1 %vm100_vm1, %v771_v39  ;;  %998 = vmatmul.msk.f32.vlgmr.msrb.gmra.mxu0 %vm100_vm1, %v771_v39  ;;  %v813_v34 = vsel %vm124_vm0, %v812_v40, -inf }
 0x3a6   :  { %v1014_v42 = vpop.eup %1013  ;;  %814 = vmax.xlane.f32.xlu0 %v813_v34 }
 0x3a7   :  { %v200_v43 = vmul.f32 0.6931472, %v1014_v42  ;;  %v509_v45 = vpop.xlane.xlu2 %508  ;;  %v1016_v48 = vpop.eup %1015 }
 0x3a8   :  { %1017 = vlog2.f32 %v509_v45  ;;  %v299_v49 = vsel %vm124_vm0, %v1016_v48, 0.0 }
 0x3a9   :  { %v201_v47 = vsub.f32 %v193_v0, %v200_v43  ;;  %1019 = vpow2.f32 %v609_v46 }
 0x3ab   :  { %202 = vst.msk [vmem:[#allocation8] sm:$0xff] %vm124_vm0, %v201_v47 }
 0x3ae   :  { %v1018_v50 = vpop.eup %1017  ;;  %300 = vadd.xlane.f32.xlu0 %v299_v49 }
 0x3af   :  { %v511_v51 = vmul.f32 0.6931472, %v1018_v50  ;;  %v1020_v53 = vpop.eup %1019 }
 0x3b0   :  { %v611_v54 = vsel %vm124_vm0, %v1020_v53, 0.0 }
 0x3b1   :  { %v512_v52 = vsub.f32 %v504_v17, %v511_v51 }
 0x3b3   :  { %514 = vst.msk [vmem:[#allocation8 + $0x18] sm:$0xff] %vm124_vm0, %v512_v52 }
 0x3b6   :  { %612 = vadd.xlane.f32.xlu0 %v611_v54 }
 0x419   :  { %v815_v55 = vpop.xlane.xlu0 %814 }
 0x41a   :  { %v816_v56 = vsub.f32 %v812_v40, %v815_v55 }
 0x41c   :  { %v817_v57 = vmul.f32 1.442695, %v816_v56 }
 0x41e   :  { %1021 = vpow2.f32 %v817_v57 }
 0x421   :  { %v301_v61 = vpop.xlane.xlu0 %300 }
 0x422   :  { %1023 = vlog2.f32 %v301_v61  ;;  %v849_v63 = vpop.f32.mrf.mxu1  ;;  %v893_v12 = vpop.f32.mrf.mxu0 }
 0x423   :  { %v873_v4 = vadd.f32 %v872_v59, %v849_v63  ;;  %v914_v7 = vadd.f32 %v913_v60, %v893_v12  ;;  %1025 = vpow2.f32 %v401_v62 }
 0x424   :  { %v1022_v1 = vpop.eup %1021 }
 0x425   :  { %v875_v0 = vadd.f32 %v1344_v16, %v873_v4  ;;  %v819_v3 = vsel %vm124_vm0, %v1022_v1, 0.0  ;;  %v916_v2 = vadd.f32 %v1352_v21, %v914_v7 }
 0x426   :  { %820 = vadd.xlane.f32.xlu2 %v819_v3 }
 0x427   :  { %931 = vst.msk [vmem:[#allocation9] sm:$0xff] %vm100_vm1, %v875_v0  ;;  %v917_v8 = vsel %vm124_vm0, %v916_v2, -inf }
 0x428   :  { %v1024_v9 = vpop.eup %1023  ;;  %918 = vmax.xlane.f32.xlu1 %v917_v8  ;;  %955 = dma.vmem_to_hbm [thread:$0]  %s951_s7, 128, %s953_s25, [#allocation10]  }
 0x429   :  { %v303_v6 = vmul.f32 0.6931472, %v1024_v9  ;;  %v613_v13 = vpop.xlane.xlu0 %612  ;;  %v1026_v14 = vpop.eup %1025 }
 0x42a   :  { %1027 = vlog2.f32 %v613_v13  ;;  %v403_v21 = vsel %vm124_vm0, %v1026_v14, 0.0 }
 0x42b   :  { %v304_v16 = vsub.f32 %v1467_v29, %v303_v6  ;;  %1029 = vpow2.f32 %v713_v5 }
 0x42d   :  { %306 = vst.msk [vmem:[#allocation8 + $0x8] sm:$0xff] %vm124_vm0, %v304_v16 }
 0x430   :  { %v1028_v11 = vpop.eup %1027  ;;  %404 = vadd.xlane.f32.xlu1 %v403_v21 }
 0x431   :  { %v615_v10 = vmul.f32 0.6931472, %v1028_v11  ;;  %v1030_v17 = vpop.eup %1029 }
 0x432   :  { %v715_v18 = vsel %vm124_vm0, %v1030_v17, 0.0 }
 0x433   :  { %v616_v15 = vsub.f32 %v1472_v41, %v615_v10 }
 0x435   :  { %618 = vst.msk [vmem:[#allocation8 + $0x20] sm:$0xff] %vm124_vm0, %v616_v15 }
 0x438   :  { %716 = vadd.xlane.f32.xlu1 %v715_v18 }
 0x499   :  { %v821_v19 = vpop.xlane.xlu2 %820 }
 0x49a   :  { %1031 = vlog2.f32 %v821_v19 }
 0x49b   :  { %v919_v20 = vpop.xlane.xlu1 %918 }
 0x49c   :  { %v920_v22 = vsub.f32 %v916_v2, %v919_v20 }
 0x49e   :  { %v921_v23 = vmul.f32 1.442695, %v920_v22 }
 0x4a0   :  { %v1032_v24 = vpop.eup %1031  ;;  %1033 = vpow2.f32 %v921_v23 }
 0x4a1   :  { %v823_v25 = vmul.f32 0.6931472, %v1032_v24 }
 0x4a3   :  { %v824_v26 = vsub.f32 %v816_v56, %v823_v25  ;;  %v405_v27 = vpop.xlane.xlu1 %404 }
 0x4a4   :  { %1035 = vlog2.f32 %v405_v27 }
 0x4a5   :  { %826 = vst.msk [vmem:[#allocation8 + $0x30] sm:$0xff] %vm124_vm0, %v824_v26 }
 0x4a6   :  { %v1034_v28 = vpop.eup %1033 }
 0x4a7   :  { %v923_v29 = vsel %vm124_vm0, %v1034_v28, 0.0 }
 0x4a8   :  { %924 = vadd.xlane.f32.xlu0 %v923_v29 }
 0x4aa   :  { %v1036_v30 = vpop.eup %1035 }
 0x4ab   :  { %v407_v31 = vmul.f32 0.6931472, %v1036_v30  ;;  %v717_v32 = vpop.xlane.xlu1 %716 }
 0x4ac   :  { %1037 = vlog2.f32 %v717_v32 }
 0x4ad   :  { %v408_v33 = vsub.f32 %v1484_v58, %v407_v31 }
 0x4af   :  { %410 = vst.msk [vmem:[#allocation8 + $0x10] sm:$0xff] %vm124_vm0, %v408_v33 }
 0x4b2   :  { %v1038_v35 = vpop.eup %1037 }
 0x4b3   :  { %v719_v36 = vmul.f32 0.6931472, %v1038_v35 }
 0x4b5   :  { %v720_v37 = vsub.f32 %v712_v44, %v719_v36 }
 0x4b7   :  { %722 = vst.msk [vmem:[#allocation8 + $0x28] sm:$0xff] %vm124_vm0, %v720_v37 }
 0x51b   :  { %v925_v38 = vpop.xlane.xlu0 %924 }
 0x51c   :  { %1039 = vlog2.f32 %v925_v38 }
 0x522   :  { %v1040_v39 = vpop.eup %1039 }
 0x523   :  { %v927_v40 = vmul.f32 0.6931472, %v1040_v39 }
 0x525   :  { %v928_v41 = vsub.f32 %v920_v22, %v927_v40 }
 0x527   :  { %930 = vst.msk [vmem:[#allocation8 + $0x38] sm:$0xff] %vm124_vm0, %v928_v41 }
 0x528   :  { %944 = dma.vmem_to_hbm [thread:$0]  %s937_s26, 1024, %s939_s28, [#allocation4], %s1171_s19, %s1171_s19, %s1172_s20  }
 0x529   :  { %1165 = dma.done.wait [#allocation4], 1024  }
 0x52a   :  { %1166 = vsyncadd [#allocation4], 4294966272 }
 0x52b   :  { %1167 = dma.done.wait [#allocation10], 128  }
 0x52c   :  { %1168 = vsyncadd [#allocation10], 4294967168 }
 0x52d   :  { %964 = vsyncpa [#allocation3], 1 }
 0x52e   :  { %965 = vsyncpa [#allocation6], 1 }
 0x52f   :  { %966 = vsyncpa [#allocation4], 1 }
 0x530   :  { %967 = vsyncpa [#allocation10], 1 }

</bundles_post_ra>
